<compile_context>
chip_gen: v7x
topology: tpu7x:2x2x1
jax: 0.10.0
libtpu: 0.0.40
codegen_flags: <defaults>
</compile_context>

<pallas_src>
import numpy as np
import jax
import jax.numpy as jnp
from jax import lax
from jax.experimental import pallas as pl
from jax.experimental.pallas import tpu as pltpu

# ---------------- small shapes consistent with the module ----------------
B = 2            # test batch
C_IN = 4         # input channels
H = W = 16       # spatial
HW = H * W
F = 16           # conv output channels
NC = 8           # classes (encoder classification head -> logits)
E = 32           # embedding / projection-q dimension
N_TRAIN = 64     # in-domain train set used to fit the LOF
K_LOF = 20       # LocalOutlierFactor(n_neighbors=20)  (module default)
CONTAMINATION = 0.1
THRESHOLD = -0.5  # LOFOODClassifier default threshold
KP = C_IN * 9    # im2col feature size for a 3x3 conv

# --------- constant-slab row layout (all offsets multiples of 8) ----------
ROW_CONV = 0      # rows  0..15 : conv weight^T (+bias col)  (F, KP+1)
ROW_HEADW = 16    # rows 16..31 : fused head weight          (F, NC+E)
ROW_HEADB = 32    # row  32     : fused head bias            (1, NC+E)
ROW_TRAIN = 40    # rows 40..71 : train embeddings^T         (E, N_TRAIN)
ROW_STATS = 72    # rows 72..74 : [train_sq ; kdist ; lrd]   (3, N_TRAIN)
SLAB_ROWS = 80
OUT_W = 128       # packed output lane width


# ---------------------------- glue (plain JAX) ----------------------------
def im2col_3x3_t(x_nchw):
    """NCHW -> (C*9 + 1, B*H*W) transposed patches (3x3, padding=1, stride=1).
    Feature index = c*9 + k; spatial index = b*HW + h*W + w.  The trailing
    ones ROW folds the conv bias into the conv weight."""
    b, c, h, w = x_nchw.shape
    xp = jnp.pad(x_nchw, ((0, 0), (0, 0), (1, 1), (1, 1)))
    cols = [xp[:, :, dy:dy + h, dx:dx + w] for dy in range(3) for dx in range(3)]
    p = jnp.stack(cols, axis=0)                 # (9, B, C, H, W)
    p = jnp.transpose(p, (2, 0, 1, 3, 4))       # (C, 9, B, H, W)
    p = p.reshape(c * 9, b * h * w).astype(jnp.float32)
    ones = jnp.ones((1, b * h * w), jnp.float32)
    return jnp.concatenate([p, ones], axis=0)   # (KP+1, B*HW)


def init_params(key):
    ks = jax.random.split(key, 6)
    s = 0.1
    return dict(
        conv_w=s * jax.random.normal(ks[0], (KP, F), jnp.float32),
        conv_b=s * jax.random.normal(ks[1], (1, F), jnp.float32),
        w_logits=s * jax.random.normal(ks[2], (F, NC), jnp.float32),
        b_logits=s * jax.random.normal(ks[3], (1, NC), jnp.float32),
        w_embed=s * jax.random.normal(ks[4], (F, E), jnp.float32),
        b_embed=s * jax.random.normal(ks[5], (1, E), jnp.float32),
    )


def encoder_weights(params):
    """conv_w_t : (F, KP+1) = [conv_w ; conv_b]^T   (bias col, ones row in patches)
       head_w   : (F, NC+E) = [w_logits | w_embed]
       head_b   : (1, NC+E) = [b_logits | b_embed]"""
    conv_w_t = jnp.concatenate([params['conv_w'], params['conv_b']], axis=0).T
    head_w = jnp.concatenate([params['w_logits'], params['w_embed']], axis=1)
    head_b = jnp.concatenate([params['b_logits'], params['b_embed']], axis=1)
    return conv_w_t, head_w, head_b


def encoder_apply(x_nchw, conv_w_t, head_w, head_b):
    """Pure-JAX encoder (same math as the kernel): transposed 3x3 conv GEMM
    (bf16 MXU operands, f32 accumulation) + ReLU + global average pool +
    fused heads with broadcast bias add."""
    n = x_nchw.shape[0]
    pt = im2col_3x3_t(x_nchw).astype(jnp.bfloat16)               # (KP+1, n*HW)
    conv_t = jnp.maximum(
        jnp.dot(conv_w_t.astype(jnp.bfloat16), pt,
                preferred_element_type=jnp.float32), 0.0)        # (F, n*HW)
    pooled = conv_t.reshape(F, n, HW).mean(axis=2).T             # (n, F)
    head = jnp.dot(pooled, head_w, preferred_element_type=jnp.float32) + head_b
    return head[:, :NC], head[:, NC:]                            # logits, embeddings (q)


def fit_lof(train_emb, k, contamination):
    """Equivalent of LocalOutlierFactor(novelty=True).fit on train embeddings."""
    n = train_emb.shape[0]
    sq = jnp.sum(train_emb ** 2, axis=1)
    d2 = sq[:, None] + sq[None, :] - 2.0 * train_emb @ train_emb.T
    d = jnp.sqrt(jnp.maximum(d2, 0.0))
    d = d.at[jnp.arange(n), jnp.arange(n)].set(jnp.inf)    # exclude self
    neg_d, idx = lax.top_k(-d, k)
    nbr_d = -neg_d                                         # (n, k) ascending
    kdist = nbr_d[:, -1]                                   # k-distance per train point
    reach = jnp.maximum(nbr_d, kdist[idx])
    lrd = 1.0 / (jnp.mean(reach, axis=1) + 1e-10)
    nof = -jnp.mean(lrd[idx] / lrd[:, None], axis=1)       # negative_outlier_factor_
    offset = jnp.percentile(nof, 100.0 * contamination)
    return kdist, lrd, offset


def pack_constants(conv_w_t, head_w, head_b, train_emb, kdist, lrd):
    """Pack every constant operand into one lane-dense (80, 128) f32 VMEM slab
    with 8-row-aligned sections so in-kernel slices stay tile-aligned."""
    slab = jnp.zeros((SLAB_ROWS, 128), jnp.float32)
    slab = slab.at[ROW_CONV:ROW_CONV + F, :KP + 1].set(conv_w_t)
    slab = slab.at[ROW_HEADW:ROW_HEADW + F, :NC + E].set(head_w)
    slab = slab.at[ROW_HEADB, :NC + E].set(head_b[0])
    slab = slab.at[ROW_TRAIN:ROW_TRAIN + E, :N_TRAIN].set(train_emb.T)
    slab = slab.at[ROW_STATS + 0, :N_TRAIN].set(jnp.sum(train_emb ** 2, axis=1))
    slab = slab.at[ROW_STATS + 1, :N_TRAIN].set(kdist)
    slab = slab.at[ROW_STATS + 2, :N_TRAIN].set(lrd)
    return slab


def forward_ref(x, conv_w_t, head_w, head_b, train_emb, kdist, lrd, offset, threshold):
    """Pure-JAX reference of LOFOODClassifier.forward (for checking)."""
    logits, emb = encoder_apply(x, conv_w_t, head_w, head_b)
    sq_x = jnp.sum(emb ** 2, axis=1, keepdims=True)
    sq_t = jnp.sum(train_emb ** 2, axis=1)[None, :]
    d = jnp.sqrt(jnp.maximum(sq_x + sq_t - 2.0 * emb @ train_emb.T, 0.0))
    neg_d, idx = lax.top_k(-d, K_LOF)
    nbr_d = -neg_d
    reach = jnp.maximum(nbr_d, kdist[idx])
    x_lrd = 1.0 / (jnp.mean(reach, axis=1) + 1e-10)
    score = -jnp.mean(lrd[idx] / x_lrd[:, None], axis=1)
    dec = score - offset
    ood = dec < threshold
    cls = jnp.where(ood, -1, jnp.argmax(logits, axis=1))
    return logits, emb, dec, ood, cls


# ----------------------------- Pallas kernel ------------------------------
def lof_forward_kernel(patches_ref, const_ref, scal_ref, out_ref):
    f32 = jnp.float32

    # --- encoder: transposed 3x3 conv GEMM (bias folded in) + ReLU --------
    # conv_t = W^T(F, KP+1) @ patches^T(KP+1, B*HW)  -> lane-dense (16, 512)
    conv_w = const_ref[ROW_CONV:ROW_CONV + F, :KP + 1].astype(jnp.bfloat16)
    conv_t = jnp.dot(conv_w, patches_ref[...], preferred_element_type=f32)
    conv_t = jnp.maximum(conv_t, 0.0)                               # (F, B*HW)

    # --- global average pool: one aligned 256-lane reduce per sample ------
    pooled_t = jnp.concatenate(
        [jnp.sum(conv_t[:, b * HW:(b + 1) * HW], axis=1, keepdims=True)
         for b in range(B)], axis=1) * f32(1.0 / HW)                # (F, B)
    pooled = pooled_t.T                                             # (B, F) tiny transpose

    # --- fused classification + projection heads (bias = broadcast row) ---
    head_w = const_ref[ROW_HEADW:ROW_HEADW + F, :NC + E]            # (F, NC+E)
    head_b = const_ref[ROW_HEADB:ROW_HEADB + 1, :NC + E]            # (1, NC+E)
    head = jnp.dot(pooled, head_w, preferred_element_type=f32) + head_b
    logits = head[:, :NC]                                           # (B, NC)
    emb = head[:, NC:]                                              # (B, E)

    # --- LOF decision_function: distances to the fitted training set ------
    train_t = const_ref[ROW_TRAIN:ROW_TRAIN + E, :N_TRAIN]          # (E, N)
    stats = const_ref[ROW_STATS:ROW_STATS + 3, :N_TRAIN]            # (3, N)
    tr_sq = stats[0:1, :]
    kdist = stats[1:2, :]
    lrd = stats[2:3, :]
    x_sq = jnp.sum(emb * emb, axis=1, keepdims=True)                # (B, 1)
    d2 = x_sq + tr_sq - 2.0 * jnp.dot(emb, train_t, preferred_element_type=f32)
    d = jnp.sqrt(jnp.maximum(d2, 0.0))                              # (B, N)

    # --- k-nearest-neighbour mask via a parallel rank-count pass ----------
    # rank[j] = #{ i : d_i < d_j  or (d_i == d_j and i < j) }; ties broken by
    # lower index, identical to lax.top_k.  Unrolled over the B=2 samples with
    # 2-D ops only (one (N,N) compare + one reduce each).
    ii = lax.broadcasted_iota(jnp.int32, (N_TRAIN, N_TRAIN), 0)
    jj = lax.broadcasted_iota(jnp.int32, (N_TRAIN, N_TRAIN), 1)
    idx_before = ii < jj                                            # loop-invariant
    d_t = d.T                                                       # (N, B)
    mask_rows = []
    for b in range(B):
        row = d[b:b + 1, :]                                         # (1, N)  d_j
        col = d_t[:, b:b + 1]                                       # (N, 1)  d_i
        before = (col < row) | ((col == row) & idx_before)          # (N, N)
        rank = jnp.sum(before.astype(f32), axis=0, keepdims=True)   # (1, N)
        mask_rows.append((rank < f32(K_LOF)).astype(f32))
    nbr_mask = jnp.concatenate(mask_rows, axis=0)                   # (B, N), exactly K ones/row

    inv_k = f32(1.0 / K_LOF)
    reach = jnp.maximum(d, kdist)                                   # (B, N)
    mean_reach = jnp.sum(nbr_mask * reach, axis=1, keepdims=True) * inv_k
    mean_lrd = jnp.sum(nbr_mask * lrd, axis=1, keepdims=True) * inv_k
    # score_samples = -mean_lrd / x_lrd  with  x_lrd = 1 / (mean_reach + eps)
    score = -(mean_lrd * (mean_reach + f32(1e-10)))                 # (B, 1)
    decision = score - scal_ref[0]                                  # minus offset_
    ood = decision < scal_ref[1]                                    # < threshold

    # --- argmax over logits (ties -> smallest index, as np.argmax) --------
    ids = lax.broadcasted_iota(jnp.int32, logits.shape, 1)
    mx = jnp.max(logits, axis=1, keepdims=True)
    pred = jnp.min(jnp.where(logits >= mx, ids, NC), axis=1, keepdims=True)
    cls = jnp.where(ood, jnp.int32(-1), pred)

    # --- single full-width packed store: [logits|emb|decision|ood|cls|0] ---
    pad = jnp.zeros((B, OUT_W - (NC + E + 3)), f32)
    out_ref[...] = jnp.concatenate(
        [head, decision, ood.astype(f32), cls.astype(f32), pad], axis=1)


@jax.jit
def lof_ood_forward(x_nchw, const_slab, scal):
    """LOFOODClassifier.forward hot path in one Pallas kernel invocation.
    3 input DMAs (bf16 patches, f32 constant slab, SMEM scalar pair) and one
    full-width f32 output slab."""
    patches_t = im2col_3x3_t(x_nchw).astype(jnp.bfloat16)           # (KP+1, B*HW)
    out = pl.pallas_call(
        lof_forward_kernel,
        out_shape=jax.ShapeDtypeStruct((B, OUT_W), jnp.float32),
        in_specs=[pl.BlockSpec(memory_space=pltpu.MemorySpace.VMEM),
                  pl.BlockSpec(memory_space=pltpu.MemorySpace.VMEM),
                  pl.BlockSpec(memory_space=pltpu.MemorySpace.SMEM)],
        out_specs=pl.BlockSpec(memory_space=pltpu.MemorySpace.VMEM),
    )(patches_t, const_slab, scal)
    logits = out[:, :NC]
    emb = out[:, NC:NC + E]
    decision = out[:, NC + E]
    ood = out[:, NC + E + 1].astype(jnp.int32)
    cls = out[:, NC + E + 2].astype(jnp.int32)
    return logits, emb, decision, ood, cls


# --------------------------------- main -----------------------------------
if __name__ == "__main__":
    key = jax.random.PRNGKey(0)
    kp, kx, kt = jax.random.split(key, 3)
    params = init_params(kp)
    x = jax.random.normal(kx, (B, C_IN, H, W), jnp.float32)
    x_train = jax.random.normal(kt, (N_TRAIN, C_IN, H, W), jnp.float32)

    conv_w_t, head_w, head_b = encoder_weights(params)

    # "fit_lof": fit LOF state on in-domain training embeddings (plain-JAX glue,
    # mirrors sklearn LocalOutlierFactor(novelty=True).fit).
    # TODO(synk): the sklearn KNN classifier branch (fit_lof_and_knn / forward_knn)
    # is not part of forward() and is not implemented.
    _, train_emb = encoder_apply(x_train, conv_w_t, head_w, head_b)
    kdist, lrd, offset = fit_lof(train_emb, K_LOF, CONTAMINATION)

    # Pack every constant operand into one (80, 128) f32 slab + one SMEM pair.
    const_slab = pack_constants(conv_w_t, head_w, head_b, train_emb, kdist, lrd)
    scal = jnp.stack([offset.astype(jnp.float32),
                      jnp.float32(THRESHOLD)]).astype(jnp.float32)  # (2,)

    outs = jax.block_until_ready(lof_ood_forward(x, const_slab, scal))
    logits_k, emb_k, dec_k, ood_k, cls_k = outs

    # reference check (pure JAX, same bf16-conv encoder math)
    logits_r, emb_r, dec_r, ood_r, cls_r = forward_ref(
        x, conv_w_t, head_w, head_b, train_emb, kdist, lrd, offset, THRESHOLD)
    assert np.allclose(np.asarray(logits_k), np.asarray(logits_r), rtol=2e-3, atol=2e-3)
    assert np.allclose(np.asarray(emb_k), np.asarray(emb_r), rtol=2e-3, atol=2e-3)
    assert np.allclose(np.asarray(dec_k), np.asarray(dec_r), rtol=2e-3, atol=2e-3)

    # Same return convention as LOFOODClassifier.forward: (ood_flags, cls_preds)
    ood_flags = [bool(v) for v in np.asarray(ood_k)]
    cls_preds = [int(v) for v in np.asarray(cls_k)]

    print("KERNEL_OK")
</pallas_src>

<mosaic_0001>
module attributes {stable_mosaic.version = 11 : i64} {
  func.func @lof_forward_kernel(%arg0: memref<37x512xbf16, #tpu.memory_space<vmem>>, %arg1: memref<80x128xf32, #tpu.memory_space<vmem>>, %arg2: memref<2xf32, #tpu.memory_space<smem>>, %arg3: memref<2x128xf32, #tpu.memory_space<vmem>>) attributes {dimension_semantics = [], scalar_prefetch = 0 : i64, scratch_operands = 0 : i64, tpu.core_type = #tpu.core_type<tc>} {
    %c0 = arith.constant 0 : index
    %c0_0 = arith.constant 0 : index
    %0 = vector.load %arg1[%c0, %c0_0] : memref<80x128xf32, #tpu.memory_space<vmem>>, vector<16x37xf32>
    %1 = arith.truncf %0 : vector<16x37xf32> to vector<16x37xbf16>
    %c0_1 = arith.constant 0 : index
    %c0_2 = arith.constant 0 : index
    %2 = vector.load %arg0[%c0_1, %c0_2] : memref<37x512xbf16, #tpu.memory_space<vmem>>, vector<37x512xbf16>
    %cst = arith.constant dense<0.000000e+00> : vector<16x512xf32>
    %3 = tpu.matmul %1, %2, %cst {dimension_numbers = #tpu.dot_dimension_numbers<[1], [0], [0], [1], [0, 0, 1, 1], [], []>} : vector<16x37xbf16>, vector<37x512xbf16>, vector<16x512xf32> -> vector<16x512xf32>
    %cst_3 = arith.constant 0.000000e+00 : f32
    %4 = vector.broadcast %cst_3 : f32 to vector<16x512xf32>
    %5 = arith.maximumf %3, %4 : vector<16x512xf32>
    %6 = vector.extract_strided_slice %5 {offsets = [0, 0], sizes = [16, 256], strides = [1, 1]} : vector<16x512xf32> to vector<16x256xf32>
    %cst_4 = arith.constant dense<0.000000e+00> : vector<16xf32>
    %7 = vector.multi_reduction <add>, %6, %cst_4 [1] : vector<16x256xf32> to vector<16xf32>
    %8 = vector.shape_cast %7 : vector<16xf32> to vector<16x1xf32>
    %9 = vector.extract_strided_slice %5 {offsets = [0, 256], sizes = [16, 256], strides = [1, 1]} : vector<16x512xf32> to vector<16x256xf32>
    %cst_5 = arith.constant dense<0.000000e+00> : vector<16xf32>
    %10 = vector.multi_reduction <add>, %9, %cst_5 [1] : vector<16x256xf32> to vector<16xf32>
    %11 = vector.shape_cast %10 : vector<16xf32> to vector<16x1xf32>
    %12 = tpu.concatenate %8, %11 in 1 : vector<16x1xf32>, vector<16x1xf32> -> vector<16x2xf32>
    %cst_6 = arith.constant 3.906250e-03 : f32
    %13 = vector.broadcast %cst_6 : f32 to vector<16x2xf32>
    %14 = arith.mulf %12, %13 : vector<16x2xf32>
    %15 = tpu.transpose %14, [1, 0] : vector<16x2xf32> -> vector<2x16xf32>
    %c16 = arith.constant 16 : index
    %c0_7 = arith.constant 0 : index
    %16 = vector.load %arg1[%c16, %c0_7] : memref<80x128xf32, #tpu.memory_space<vmem>>, vector<16x40xf32>
    %c32 = arith.constant 32 : index
    %c0_8 = arith.constant 0 : index
    %17 = vector.load %arg1[%c32, %c0_8] : memref<80x128xf32, #tpu.memory_space<vmem>>, vector<1x40xf32>
    %cst_9 = arith.constant dense<0.000000e+00> : vector<2x40xf32>
    %18 = tpu.matmul %15, %16, %cst_9 {dimension_numbers = #tpu.dot_dimension_numbers<[1], [0], [0], [1], [0, 0, 1, 1], [], []>} : vector<2x16xf32>, vector<16x40xf32>, vector<2x40xf32> -> vector<2x40xf32>
    %19 = vector.broadcast %17 : vector<1x40xf32> to vector<2x40xf32>
    %20 = arith.addf %18, %19 : vector<2x40xf32>
    %21 = vector.extract_strided_slice %20 {offsets = [0, 0], sizes = [2, 8], strides = [1, 1]} : vector<2x40xf32> to vector<2x8xf32>
    %22 = vector.extract_strided_slice %20 {offsets = [0, 8], sizes = [2, 32], strides = [1, 1]} : vector<2x40xf32> to vector<2x32xf32>
    %c40 = arith.constant 40 : index
    %c0_10 = arith.constant 0 : index
    %23 = vector.load %arg1[%c40, %c0_10] : memref<80x128xf32, #tpu.memory_space<vmem>>, vector<32x64xf32>
    %c72 = arith.constant 72 : index
    %c0_11 = arith.constant 0 : index
    %24 = vector.load %arg1[%c72, %c0_11] : memref<80x128xf32, #tpu.memory_space<vmem>>, vector<3x64xf32>
    %25 = vector.extract_strided_slice %24 {offsets = [0, 0], sizes = [1, 64], strides = [1, 1]} : vector<3x64xf32> to vector<1x64xf32>
    %26 = vector.extract_strided_slice %24 {offsets = [1, 0], sizes = [1, 64], strides = [1, 1]} : vector<3x64xf32> to vector<1x64xf32>
    %27 = vector.extract_strided_slice %24 {offsets = [2, 0], sizes = [1, 64], strides = [1, 1]} : vector<3x64xf32> to vector<1x64xf32>
    %28 = arith.mulf %22, %22 : vector<2x32xf32>
    %cst_12 = arith.constant dense<0.000000e+00> : vector<2xf32>
    %29 = vector.multi_reduction <add>, %28, %cst_12 [1] : vector<2x32xf32> to vector<2xf32>
    %30 = vector.shape_cast %29 : vector<2xf32> to vector<2x1xf32>
    %31 = vector.broadcast %30 : vector<2x1xf32> to vector<2x64xf32>
    %32 = vector.broadcast %25 : vector<1x64xf32> to vector<2x64xf32>
    %33 = arith.addf %31, %32 : vector<2x64xf32>
    %cst_13 = arith.constant dense<0.000000e+00> : vector<2x64xf32>
    %34 = tpu.matmul %22, %23, %cst_13 {dimension_numbers = #tpu.dot_dimension_numbers<[1], [0], [0], [1], [0, 0, 1, 1], [], []>} : vector<2x32xf32>, vector<32x64xf32>, vector<2x64xf32> -> vector<2x64xf32>
    %cst_14 = arith.constant 2.000000e+00 : f32
    %35 = vector.broadcast %cst_14 : f32 to vector<2x64xf32>
    %36 = arith.mulf %35, %34 : vector<2x64xf32>
    %37 = arith.subf %33, %36 : vector<2x64xf32>
    %cst_15 = arith.constant 0.000000e+00 : f32
    %38 = vector.broadcast %cst_15 : f32 to vector<2x64xf32>
    %39 = arith.maximumf %37, %38 : vector<2x64xf32>
    %40 = math.sqrt %39 : vector<2x64xf32>
    %41 = tpu.iota {dimensions = array<i32: 0>} : vector<64x64xi32>
    %42 = tpu.iota {dimensions = array<i32: 1>} : vector<64x64xi32>
    %43 = arith.cmpi slt, %41, %42 : vector<64x64xi32>
    %44 = tpu.transpose %40, [1, 0] : vector<2x64xf32> -> vector<64x2xf32>
    %45 = vector.extract_strided_slice %40 {offsets = [0, 0], sizes = [1, 64], strides = [1, 1]} : vector<2x64xf32> to vector<1x64xf32>
    %46 = vector.extract_strided_slice %44 {offsets = [0, 0], sizes = [64, 1], strides = [1, 1]} : vector<64x2xf32> to vector<64x1xf32>
    %47 = vector.broadcast %46 : vector<64x1xf32> to vector<64x64xf32>
    %48 = vector.broadcast %45 : vector<1x64xf32> to vector<64x64xf32>
    %49 = arith.cmpf olt, %47, %48 : vector<64x64xf32>
    %50 = vector.broadcast %46 : vector<64x1xf32> to vector<64x64xf32>
    %51 = vector.broadcast %45 : vector<1x64xf32> to vector<64x64xf32>
    %52 = arith.cmpf oeq, %50, %51 : vector<64x64xf32>
    %53 = arith.andi %52, %43 : vector<64x64xi1>
    %54 = arith.ori %49, %53 : vector<64x64xi1>
    %55 = arith.extui %54 : vector<64x64xi1> to vector<64x64xi32>
    %56 = arith.sitofp %55 : vector<64x64xi32> to vector<64x64xf32>
    %cst_16 = arith.constant dense<0.000000e+00> : vector<64xf32>
    %57 = vector.multi_reduction <add>, %56, %cst_16 [0] : vector<64x64xf32> to vector<64xf32>
    %58 = vector.shape_cast %57 : vector<64xf32> to vector<1x64xf32>
    %cst_17 = arith.constant 2.000000e+01 : f32
    %59 = vector.broadcast %cst_17 : f32 to vector<1x64xf32>
    %60 = arith.cmpf olt, %58, %59 : vector<1x64xf32>
    %61 = arith.extui %60 : vector<1x64xi1> to vector<1x64xi32>
    %62 = arith.sitofp %61 : vector<1x64xi32> to vector<1x64xf32>
    %63 = vector.extract_strided_slice %40 {offsets = [1, 0], sizes = [1, 64], strides = [1, 1]} : vector<2x64xf32> to vector<1x64xf32>
    %64 = vector.extract_strided_slice %44 {offsets = [0, 1], sizes = [64, 1], strides = [1, 1]} : vector<64x2xf32> to vector<64x1xf32>
    %65 = vector.broadcast %64 : vector<64x1xf32> to vector<64x64xf32>
    %66 = vector.broadcast %63 : vector<1x64xf32> to vector<64x64xf32>
    %67 = arith.cmpf olt, %65, %66 : vector<64x64xf32>
    %68 = vector.broadcast %64 : vector<64x1xf32> to vector<64x64xf32>
    %69 = vector.broadcast %63 : vector<1x64xf32> to vector<64x64xf32>
    %70 = arith.cmpf oeq, %68, %69 : vector<64x64xf32>
    %71 = arith.andi %70, %43 : vector<64x64xi1>
    %72 = arith.ori %67, %71 : vector<64x64xi1>
    %73 = arith.extui %72 : vector<64x64xi1> to vector<64x64xi32>
    %74 = arith.sitofp %73 : vector<64x64xi32> to vector<64x64xf32>
    %cst_18 = arith.constant dense<0.000000e+00> : vector<64xf32>
    %75 = vector.multi_reduction <add>, %74, %cst_18 [0] : vector<64x64xf32> to vector<64xf32>
    %76 = vector.shape_cast %75 : vector<64xf32> to vector<1x64xf32>
    %cst_19 = arith.constant 2.000000e+01 : f32
    %77 = vector.broadcast %cst_19 : f32 to vector<1x64xf32>
    %78 = arith.cmpf olt, %76, %77 : vector<1x64xf32>
    %79 = arith.extui %78 : vector<1x64xi1> to vector<1x64xi32>
    %80 = arith.sitofp %79 : vector<1x64xi32> to vector<1x64xf32>
    %81 = tpu.concatenate %62, %80 in 0 : vector<1x64xf32>, vector<1x64xf32> -> vector<2x64xf32>
    %82 = vector.broadcast %26 : vector<1x64xf32> to vector<2x64xf32>
    %83 = arith.maximumf %40, %82 : vector<2x64xf32>
    %84 = arith.mulf %81, %83 : vector<2x64xf32>
    %cst_20 = arith.constant dense<0.000000e+00> : vector<2xf32>
    %85 = vector.multi_reduction <add>, %84, %cst_20 [1] : vector<2x64xf32> to vector<2xf32>
    %86 = vector.shape_cast %85 : vector<2xf32> to vector<2x1xf32>
    %cst_21 = arith.constant 5.000000e-02 : f32
    %87 = vector.broadcast %cst_21 : f32 to vector<2x1xf32>
    %88 = arith.mulf %86, %87 : vector<2x1xf32>
    %89 = vector.broadcast %27 : vector<1x64xf32> to vector<2x64xf32>
    %90 = arith.mulf %81, %89 : vector<2x64xf32>
    %cst_22 = arith.constant dense<0.000000e+00> : vector<2xf32>
    %91 = vector.multi_reduction <add>, %90, %cst_22 [1] : vector<2x64xf32> to vector<2xf32>
    %92 = vector.shape_cast %91 : vector<2xf32> to vector<2x1xf32>
    %cst_23 = arith.constant 5.000000e-02 : f32
    %93 = vector.broadcast %cst_23 : f32 to vector<2x1xf32>
    %94 = arith.mulf %92, %93 : vector<2x1xf32>
    %cst_24 = arith.constant 1.000000e-10 : f32
    %95 = vector.broadcast %cst_24 : f32 to vector<2x1xf32>
    %96 = arith.addf %88, %95 : vector<2x1xf32>
    %97 = arith.mulf %94, %96 : vector<2x1xf32>
    %cst_25 = arith.constant 0.000000e+00 : f32
    %98 = vector.broadcast %cst_25 : f32 to vector<2x1xf32>
    %99 = arith.subf %98, %97 : vector<2x1xf32>
    %c0_26 = arith.constant 0 : index
    %100 = memref.load %arg2[%c0_26] : memref<2xf32, #tpu.memory_space<smem>>
    %101 = vector.broadcast %100 : f32 to vector<2x1xf32>
    %102 = arith.subf %99, %101 : vector<2x1xf32>
    %c1 = arith.constant 1 : index
    %103 = memref.load %arg2[%c1] : memref<2xf32, #tpu.memory_space<smem>>
    %104 = vector.broadcast %103 : f32 to vector<2x1xf32>
    %105 = arith.cmpf olt, %102, %104 : vector<2x1xf32>
    %106 = tpu.iota {dimensions = array<i32: 1>} : vector<2x8xi32>
    %cst_27 = arith.constant dense<0xFF800000> : vector<2xf32>
    %107 = vector.multi_reduction <maximumf>, %21, %cst_27 [1] : vector<2x8xf32> to vector<2xf32>
    %108 = vector.shape_cast %107 : vector<2xf32> to vector<2x1xf32>
    %109 = vector.broadcast %108 : vector<2x1xf32> to vector<2x8xf32>
    %110 = arith.cmpf oge, %21, %109 : vector<2x8xf32>
    %c8_i32 = arith.constant 8 : i32
    %111 = vector.broadcast %c8_i32 : i32 to vector<2x8xi32>
    %112 = arith.select %110, %106, %111 : vector<2x8xi1>, vector<2x8xi32>
    %cst_28 = arith.constant dense<2147483647> : vector<2xi32>
    %113 = vector.multi_reduction <minsi>, %112, %cst_28 [1] : vector<2x8xi32> to vector<2xi32>
    %114 = vector.shape_cast %113 : vector<2xi32> to vector<2x1xi32>
    %c-1_i32 = arith.constant -1 : i32
    %115 = vector.broadcast %c-1_i32 : i32 to vector<2x1xi32>
    %116 = arith.select %105, %115, %114 : vector<2x1xi1>, vector<2x1xi32>
    %cst_29 = arith.constant 0.000000e+00 : f32
    %117 = vector.broadcast %cst_29 : f32 to vector<2x85xf32>
    %118 = arith.extui %105 : vector<2x1xi1> to vector<2x1xi32>
    %119 = arith.sitofp %118 : vector<2x1xi32> to vector<2x1xf32>
    %120 = arith.sitofp %116 : vector<2x1xi32> to vector<2x1xf32>
    %121 = tpu.concatenate %20, %102, %119, %120, %117 in 1 : vector<2x40xf32>, vector<2x1xf32>, vector<2x1xf32>, vector<2x1xf32>, vector<2x85xf32> -> vector<2x128xf32>
    %c0_30 = arith.constant 0 : index
    %c0_31 = arith.constant 0 : index
    %122 = vector.load %arg3[%c0_30, %c0_31] : memref<2x128xf32, #tpu.memory_space<vmem>>, vector<2x128xf32>
    tpu.vector_store %arg3[%c0_30, %c0_31], %121 {strides = array<i32>} : memref<2x128xf32, #tpu.memory_space<vmem>>, vector<2x128xf32>,
    return
  }
}

</mosaic_0001>

<bundles_post_ra>
// kernel: lof_ood_forward.1
= control target key start
LH: loop header
LB: loop body
LE: loop exit
PB: predicated region body
PF: predicated region fallthrough
CT: control target
= control target key end

     0   :  { %8 = vsyncpa [#allocation3], 0  ;;  %s1249_s0 = inlined_call_operand.vmem [shape: bf16[37,512], index: 0, kind: input, shape index: {}]   ;;  %s1250_s1 = inlined_call_operand.vmem [shape: f32[80,128], index: 1, kind: input, shape index: {}]   ;;  %s1251_s2 = inlined_call_operand.vmem [shape: f32[2], index: 2, kind: input, shape index: {}]   ;;  %s1252_s3 = inlined_call_operand.vmem [shape: f32[2,128], index: 3, kind: output, shape index: {}]  }
   0x1   :  { %s19_s14 = sshll.u32 %s1251_s2, 4  ;;  %s20_s14 = int_to_ptr.vmem [resolvable:$true] %s19_s14 }
   0x2   :  { %s897_s15 = scalar_lea.vmem %s20_s14, 16  ;;  %p902_p1 = scmp.lt.s32.totalorder %s20_s14, %s20_s14 }
   0x3   :  { %p898_p0 = scmp.ne.s32.totalorder %s20_s14, %s897_s15  ;;  %p903_p2 = scmp.lt.s32.totalorder %s897_s15, %s897_s15 }
   0x5   :  { %p904_p3 = por %p903_p2, %p902_p1 }
   0x7   :  { %p905_p4 = pnand %p904_p3, %p898_p0 }
   0x9   :  { %908 = shalt.err (!%p905_p4)
}
   0xa   :  { %s911_s16 = smov [#allocation2]  }
   0xb   :  { %22 = dma.vmem_to_smem %s20_s14, 16, %s911_s16, [#allocation3]  }
   0xc   :  { %909 = dma.done.wait [#allocation3], 16  }
   0xd   :  { %910 = vsyncadd [#allocation3], 4294967280 }
   0xe   :  { %26 = sfence }
   0xf   :  { %v879_v0 = vld [vmem:[%s1249_s0 + $0x4] ss:$16 sps:$4 sm:$0xff]   ;;  %vm95_vm0 = vcmask 1041408   ;;  %vm96_vm1 = vcmask 1042432   ;;  %v881_v1 = vld [vmem:[%s1249_s0] ss:$16 sps:$4 sm:$0xff]  }
  0x10   :  { %111 = vmatprep.subr.bf16.mxu0 %v879_v0  ;;  %v882_v2 = vld [vmem:[%s1249_s0 + $0xc] ss:$16 sps:$4 sm:$0xff]   ;;  %v884_v3 = vld [vmem:[%s1249_s0 + $0x8] ss:$16 sps:$4 sm:$0xff]   ;;  %v912_v4 = vmov 65535   ;;  %v913_v6 = vmov 0  }
  0x11   :  { %v97_v5 = vsel %vm95_vm0, 4294967295, %v912_v4  ;;  %143 = vmatprep.mubr.bf16.mxu0 %v913_v6  ;;  %112 = vmatpush1.bf16.msra.mxu0 %v881_v1  ;;  %v885_v7 = vld [vmem:[%s1249_s0 + $0x24] ss:$16 sps:$4 sm:$0xff]   ;;  %v887_v8 = vld [vmem:[%s1249_s0 + $0x20] ss:$16 sps:$4 sm:$0xff]   ;;  %v29_v19 = vld [vmem:[%s1250_s1 + $0x8] sm:$0xff] }
  0x12   :  { %186 = vmatprep.mubr.bf16.mxu1 %v913_v6  ;;  %154 = vmatprep.subr.bf16.mxu1 %v882_v2  ;;  %v888_v9 = vld [vmem:[%s1249_s0 + $0x2c] ss:$16 sps:$4 sm:$0xff]   ;;  %v98_v10 = vsel %vm96_vm1, %v97_v5, 0  ;;  %v890_v11 = vld [vmem:[%s1249_s0 + $0x28] ss:$16 sps:$4 sm:$0xff]   ;;  %v28_v18 = vld [vmem:[%s1250_s1] sm:$0xff] }
  0x13   :  { %155 = vmatpush1.bf16.msra.mxu1 %v884_v3  ;;  %113 = vmatprep.subr.bf16.mxu0 %v885_v7  ;;  %v39_v12 = vld [vmem:[%s1249_s0 + $0x40] sm:$0x77]  ;;  %v40_v13 = vld [vmem:[%s1249_s0 + $0x48] sm:$0x77]  ;;  %v30_v24 = vpack.c.bf16 %v29_v19, %v28_v18  ;;  %vm91_vm2 = vcmask 302080   ;;  %v254_v45 = vld [vmem:[%s1250_s1 + $0x10] sm:$0xff] }
  0x14   :  { %156 = vmatprep.subr.bf16.mxu1 %v888_v9  ;;  %v795_v14 = vcombine.high %v39_v12, %v39_v12  ;;  %v794_v15 = vcombine.low %v39_v12, %v39_v12  ;;  %v797_v16 = vcombine.high %v40_v13, %v40_v13  ;;  %v796_v17 = vcombine.low %v40_v13, %v40_v13  ;;  %v255_v46 = vld [vmem:[%s1250_s1 + $0x18] sm:$0xff]  ;;  %v335_v59 = vld [vmem:[%s1250_s1 + $0x28] sm:$0xff]  ;;  %v336_v60 = vld [vmem:[%s1250_s1 + $0x30] sm:$0xff]  ;;  %s917_s25 = smov 120   ;;  %s821_s28 = sld [smem:[#allocation2 + $0x1]] }
  0x15   :  { %114 = vmatpush1.bf16.msra.mxu0 %v887_v8  ;;  %v914_v47 = vmov 0.0|0.0   ;;  %v850_v48 = vpack.c.bf16 %v255_v46, %v254_v45  ;;  %vm915_vm3 = vmmov 0   ;;  %v916_v49 = vmov 0.0   ;;  %v337_v61 = vld [vmem:[%s1250_s1 + $0x38] sm:$0xff]  ;;  %v338_v63 = vld [vmem:[%s1250_s1 + $0x40] sm:$0xff] }
  0x16   :  { %v103_v20 = vand.u32 %v795_v14, %v98_v10  ;;  %v100_v21 = vand.u32 %v794_v15, %v98_v10  ;;  %v109_v22 = vand.u32 %v797_v16, %v98_v10  ;;  %v106_v23 = vand.u32 %v796_v17, %v98_v10  ;;  %v800_v1 = vld [vmem:[%s1250_s1 + $0x20] ss:$0 sm:$0xff]  ;;  %v1017_v14 = vld [vmem:[%s1250_s1 + $0x48] sm:$0x7]  ;;  %s741_s1 = sld [smem:[#allocation2]] }
  0x17   :  { %157 = vmatpush1.bf16.msra.mxu1 %v890_v11  ;;  %vm217_vm4 = vcmask 7168   ;;  %vm261_vm5 = vcmask 130048   ;;  %v853_v62 = vpack.c.bf16 %v336_v60, %v335_v59  ;;  %v856_v0 = vpack.c.bf16 %v338_v63, %v337_v61 }
  0x18   :  { %115 = vmatprep.subr.bf16.mxu0 %v103_v20  ;;  %158 = vmatprep.subr.bf16.mxu1 %v109_v22  ;;  %vm747_vm6 = vcmask 58368   ;;  %vm357_vm7 = vcmask 261120   ;;  %vm345_vm8 = vcmask 254976   ;;  %v349_v11 = vlaneseq }
  0x19   :  { %116 = vmatpush1.bf16.msra.mxu0 %v100_v21 }
  0x1a   :  { %849 = vmatprep.subr.bf16.mxu0 %v914_v47  ;;  %v1011_v12 = vshrl.u32 %v349_v11, 7 }
  0x1b   :  { %159 = vmatpush1.bf16.msra.mxu1 %v106_v23 }
  0x1c   :  { %798 = vmatmul.mubr.msk.bf16.vlgmr.msra.gmra.mrb[0].mxu0 %vm91_vm2, %v30_v24  ;;  %852 = vmatprep.subr.bf16.mxu1 %v914_v47  ;;  %v351_v13 = vsub.s32 0, %v1011_v12  ;;  %v642_v46 = vsub.s32 1, %v1011_v12  ;;  %v446_v61 = vadd.s32 40, %v1011_v12 }
  0x1d   :  { %835 = vmatprep.mubr.msk.f32.mxu0 %vm915_vm3, %v916_v49  ;;  %851 = vmatpush3.bf16.msra.mxu0 %v850_v48 }
  0x1e   :  { %799 = vmatmul.mubr.msk.bf16.vlgmr.msra.gmra.mrb[0].mxu1 %vm91_vm2, %v30_v24  ;;  %v352_v15 = vrot.slane %v1017_v14, %v351_v13 }
  0x1f   :  { %846 = vmatprep.mubr.msk.f32.mxu1 %vm915_vm3, %v916_v49  ;;  %854 = vmatpush3.bf16.msra.mxu1 %v853_v62 }
  0x20   :  { %855 = vmatprep.subr.bf16.mxu1 %v914_v47 }
  0x23   :  { %857 = vmatpush3.bf16.msra.mxu1 %v856_v0 }
  0xef   :  { %v145_v25 = vpop.f32.mrb[0].mxu0 }
  0xf0   :  { %v197_v26 = vmax.f32 %v145_v25, 0.0  ;;  %v147_v27 = vpop.f32.mrb[1].mxu0 }
  0xf1   :  { %v198_v28 = vmax.f32 %v147_v27, 0.0  ;;  %v188_v29 = vpop.f32.mrb[0].mxu1  ;;  %v149_v30 = vpop.f32.mrb[2].mxu0 }
  0xf2   :  { %v199_v31 = vmax.f32 %v188_v29, 0.0  ;;  %v201_v32 = vmax.f32 %v149_v30, 0.0  ;;  %v190_v33 = vpop.f32.mrb[1].mxu1  ;;  %v151_v34 = vpop.f32.mrb[3].mxu0  ;;  %v918_v30 = vmov 1  }
  0xf3   :  { %v200_v35 = vmax.f32 %v190_v33, 0.0  ;;  %v202_v36 = vmax.f32 %v151_v34, 0.0  ;;  %v192_v37 = vpop.f32.mrb[2].mxu1  ;;  %v205_v38 = vadd.f32 %v198_v28, %v197_v26 }
  0xf4   :  { %v203_v39 = vmax.f32 %v192_v37, 0.0  ;;  %v194_v40 = vpop.f32.mrb[3].mxu1 }
  0xf5   :  { %v204_v41 = vmax.f32 %v194_v40, 0.0  ;;  %206 = vadd.xlane.f32.xlu0 %v205_v38  ;;  %v208_v42 = vadd.f32 %v202_v36, %v201_v32  ;;  %v211_v43 = vadd.f32 %v200_v35, %v199_v31  ;;  %v1031_v38 = vand.u32 127, %v349_v11 }
  0xf7   :  { %209 = vadd.xlane.f32.xlu1 %v208_v42  ;;  %v214_v44 = vadd.f32 %v204_v41, %v203_v39  ;;  %vm451_vm12 = vcmp.lt.s32.totalorder %v1011_v12, %v1031_v38 }
  0xf9   :  { %212 = vadd.xlane.f32.xlu0 %v211_v43 }
  0xfb   :  { %215 = vadd.xlane.f32.xlu1 %v214_v44  ;;  %v442_v44 = vadd.s32 8, %v1011_v12 }
  0xfd   :  { %vm452_vm14 = vcmp.lt.s32.totalorder %v442_v44, %v1031_v38 }
 0x182   :  { %v207_v50 = vpop.xlane.xlu0 %206 }
 0x184   :  { %v210_v51 = vpop.xlane.xlu1 %209 }
 0x186   :  { %v213_v52 = vpop.xlane.xlu0 %212 }
 0x187   :  { %v218_v53 = vsel %vm217_vm4, %v207_v50, %v213_v52 }
 0x188   :  { %v216_v54 = vpop.xlane.xlu1 %215  ;;  %v220_v55 = vmul.f32 0.00390625, %v218_v53  ;;  %v444_v53 = vadd.s32 24, %v1011_v12 }
 0x189   :  { %v219_v56 = vsel %vm217_vm4, %v210_v51, %v216_v54  ;;  %v443_v51 = vadd.s32 16, %v1011_v12 }
 0x18a   :  { %222 = vxpose.xlu0.b32.start [1/2] (short) (narrow) %v220_v55, 8  ;;  %v221_v57 = vmul.f32 0.00390625, %v219_v56  ;;  %v1084_v56 = vadd.s32 32, %v1011_v12 }
 0x18e   :  { %223 = vxpose.xlu0.b32.end [2/2] (short) (narrow) %v221_v57, 8 }
 0x1b7   :  { %866 = vset.pattern.permute.xlu0 %v913_v6 }
 0x20a   :  { %v238_v58 = vpop.trf.xlu0 }
 0x20b   :  { %836 = vmatmul.mubr.msk.f32.vlgmr.msra.gmra.mrb[4].mxu0 %vm261_vm5, %v238_v58 }
 0x2de   :  { %v331_v2 = vpop.f32.mrb[4].mxu0 }
 0x2df   :  { %v1004_v3 = vadd.f32 %v800_v1, %v331_v2  ;;  %v837_v4 = vpop.f32.mrb[5].mxu0 }
 0x2e1   :  { %355 = vrot.lane.b32.xlu1 %v1004_v3, %s917_s25  ;;  %v748_v5 = vsel %vm747_vm6, %v1004_v3, -inf  ;;  %v340_v7 = vmul.f32 %v1004_v3, %v1004_v3 }
 0x2e2   :  { %749 = vmax.xlane.f32.xlu0 %v748_v5 }
 0x2e5   :  { %342 = vrot.lane.b32.xlu1 %v340_v7, %s917_s25 }
 0x353   :  { %v356_v8 = vpop.permute.xlu1 %355 }
 0x354   :  { %847 = vmatmul.mubr.msk.f32.vlgmr.msra.gmra.mrb[4].mxu1 %vm357_vm7, %v356_v8 }
 0x357   :  { %v343_v9 = vpop.permute.xlu1 %342 }
 0x358   :  { %v346_v10 = vsel %vm345_vm8, %v343_v9, 0.0 }
 0x359   :  { %347 = vadd.xlane.f32.xlu1 %v346_v10 }
 0x36f   :  { %v750_v37 = vpop.xlane.xlu0 %749 }
 0x370   :  { %vm751_vm11 = vcmp.ge.f32.partialorder %v1004_v3, %v750_v37 }
 0x371   :  { %v752_v39 = vsel %vm751_vm11, %v1031_v38, 8 }
 0x372   :  { %v1036_v40 = vsel %vm747_vm6, %v752_v39, 2147483647 }
 0x373   :  { %v755_v41 = vshra.s32 %v1036_v40, 16 }
 0x375   :  { %v1039_v42 = vcvt.s32.f32 %v755_v41 }
 0x3e6   :  { %v348_v16 = vpop.xlane.xlu1 %347 }
 0x3e7   :  { %v353_v18 = vadd.f32 %v352_v15, %v348_v16  ;;  %v447_v16 = vadd.s32 48, %v1011_v12 }
 0x427   :  { %v426_v17 = vpop.f32.mrb[4].mxu1 }
 0x428   :  { %v430_v19 = vmul.f32 2.0, %v426_v17  ;;  %v848_v20 = vpop.f32.mrb[5].mxu1 }
 0x42a   :  { %v431_v21 = vsub.f32 %v353_v18, %v430_v19  ;;  %v731_v19 = vsub.s32 2, %v1011_v12 }
 0x42c   :  { %v432_v22 = vmax.f32 %v431_v21, 0.0 }
 0x42e   :  { %895 = vrsqrt.f32 %v432_v22  ;;  %vm435_vm9 = vcmp.eq.f32.partialorder %v432_v22, inf  ;;  %v438_v25 = vand.u32 2147483648, %v432_v22  ;;  %vm437_vm10 = vcmp.eq.f32.partialorder %v432_v22, 0.0 }
 0x438   :  { %v896_v23 = vpop.eup %895 }
 0x439   :  { %v434_v24 = vmul.f32 %v896_v23, %v432_v22 }
 0x43b   :  { %v436_v26 = vsel %vm435_vm9, %v432_v22, %v434_v24 }
 0x43c   :  { %v1022_v27 = vsel %vm437_vm10, %v438_v25, %v436_v26  ;;  %vm453_vm10 = vcmp.lt.s32.totalorder %v443_v51, %v1031_v38 }
 0x43d   :  { %459 = vxpose.xlu1.b32.start.end [1/1] (short) (narrow) %v1022_v27, 64  ;;  %v1045_v43 = vrot.slane %v1022_v27, %v351_v13  ;;  %v1055_v48 = vrot.slane %v1022_v27, %v642_v46 }
 0x45b   :  { %868 = vset.pattern.permute.xlu1 %v913_v6 }
 0x4bd   :  { %v475_v28 = vpop.trf.xlu1 }
 0x4be   :  { %493 = vperm.xlu0 %866, %v475_v28  }
 0x4c1   :  { %v476_v29 = vpop.trf.xlu1 }
 0x4c2   :  { %867 = vset.pattern.permute.xlu0 %v918_v30  ;;  %498 = vperm.xlu1 %868, %v476_v29  }
 0x4c3   :  { %609 = vperm.xlu0 %867, %v475_v28  }
 0x4c5   :  { %v477_v31 = vpop.trf.xlu1 }
 0x4c6   :  { %872 = vset.pattern.permute.xlu1 %v918_v30 }
 0x4c7   :  { %613 = vperm.xlu0 %867, %v476_v29  }
 0x4c9   :  { %v478_v32 = vpop.trf.xlu1 }
 0x4ca   :  { %621 = vperm.xlu1 %872, %v478_v32  }
 0x4cb   :  { %869 = vset.pattern.permute.xlu0 %v913_v6 }
 0x4cc   :  { %503 = vperm.xlu0 %869, %v477_v31  }
 0x4cd   :  { %v479_v33 = vpop.trf.xlu1 }
 0x4ce   :  { %873 = vset.pattern.permute.xlu1 %v913_v6 }
 0x4cf   :  { %513 = vperm.xlu1 %873, %v479_v33  }
 0x4d0   :  { %870 = vset.pattern.permute.xlu0 %v918_v30 }
 0x4d1   :  { %617 = vperm.xlu0 %870, %v477_v31   ;;  %v480_v34 = vpop.trf.xlu1 }
 0x4d3   :  { %518 = vperm.xlu1 %873, %v480_v34  }
 0x4d5   :  { %871 = vset.pattern.permute.xlu0 %v913_v6  ;;  %v481_v35 = vpop.trf.xlu1 }
 0x4d6   :  { %508 = vperm.xlu0 %871, %v478_v32  }
 0x4d7   :  { %875 = vset.pattern.permute.xlu1 %v918_v30 }
 0x4d8   :  { %629 = vperm.xlu1 %875, %v480_v34  }
 0x4d9   :  { %v482_v36 = vpop.trf.xlu1 }
 0x4da   :  { %874 = vset.pattern.permute.xlu0 %v918_v30 }
 0x4db   :  { %625 = vperm.xlu0 %874, %v479_v33   ;;  %v448_v33 = vadd.s32 56, %v1011_v12 }
 0x4dc   :  { %633 = vperm.xlu1 %875, %v481_v35  }
 0x4df   :  { %876 = vset.pattern.permute.xlu0 %v913_v6 }
 0x4e0   :  { %877 = vset.pattern.permute.xlu1 %v913_v6  ;;  %523 = vperm.xlu0 %876, %v481_v35  }
 0x4e1   :  { %528 = vperm.xlu1 %877, %v482_v36  }
 0x4e4   :  { %878 = vset.pattern.permute.xlu0 %v918_v30 }
 0x4e5   :  { %637 = vperm.xlu0 %878, %v482_v36  }
 0x505   :  { %758 = vmin.xlane.f32.xlu1 %v1039_v42 }
 0x53d   :  { %v494_v6 = vpop.permute.xlu0 %493 }
 0x53e   :  { %vm543_vm13 = vcmp.eq.f32.partialorder %v494_v6, %v1045_v43  ;;  %vm535_vm0 = vcmp.lt.f32.partialorder %v494_v6, %v1045_v43 }
 0x53f   :  { %vm551_vm1 = vmand %vm543_vm13, %vm451_vm12 }
 0x540   :  { %vm1068_vm5 = vmor %vm535_vm0, %vm551_vm1 }
 0x541   :  { %v499_v45 = vpop.permute.xlu1 %498  ;;  %v803_v4 = vsel %vm1068_vm5, 1.0, %v916_v49 }
 0x542   :  { %v610_v47 = vpop.permute.xlu0 %609  ;;  %vm544_vm15 = vcmp.eq.f32.partialorder %v499_v45, %v1045_v43  ;;  %vm536_vm3 = vcmp.lt.f32.partialorder %v499_v45, %v1045_v43 }
 0x543   :  { %vm652_vm2 = vcmp.eq.f32.partialorder %v610_v47, %v1055_v48  ;;  %vm552_vm4 = vmand %vm544_vm15, %vm452_vm14  ;;  %vm644_vm7 = vcmp.lt.f32.partialorder %v610_v47, %v1055_v48 }
 0x544   :  { %vm660_vm8 = vmand %vm652_vm2, %vm451_vm12  ;;  %vm1253_vm12 = vcmp.lt.s32.totalorder %v444_v53, %v1031_v38 }
 0x545   :  { %vm1078_vm9 = vmor %vm536_vm3, %vm552_vm4 }
 0x546   :  { %v614_v50 = vpop.permute.xlu0 %613  ;;  %vm1089_vm15 = vmor %vm644_vm7, %vm660_vm8  ;;  %v804_v63 = vsel %vm1078_vm9, 1.0, %v916_v49 }
 0x547   :  { %vm653_vm6 = vcmp.eq.f32.partialorder %v614_v50, %v1055_v48  ;;  %vm645_vm11 = vcmp.lt.f32.partialorder %v614_v50, %v1055_v48  ;;  %v812_v8 = vsel %vm1089_vm15, 1.0, %v916_v49 }
 0x548   :  { %vm661_vm13 = vmand %vm653_vm6, %vm452_vm14  ;;  %vm1254_vm14 = vcmp.lt.s32.totalorder %v1084_v56, %v1031_v38 }
 0x549   :  { %v622_v54 = vpop.permute.xlu1 %621  ;;  %vm669_vm4 = vmor %vm645_vm11, %vm661_vm13 }
 0x54a   :  { %vm655_vm0 = vcmp.eq.f32.partialorder %v622_v54, %v1055_v48  ;;  %vm647_vm11 = vcmp.lt.f32.partialorder %v622_v54, %v1055_v48  ;;  %v813_v1 = vsel %vm669_vm4, 1.0, %v916_v49 }
 0x54b   :  { %v504_v57 = vpop.permute.xlu0 %503  ;;  %vm1103_vm6 = vmand %vm655_vm0, %vm1253_vm12  ;;  %vm583_vm12 = vcmask 523264  }
 0x54c   :  { %vm545_vm1 = vcmp.eq.f32.partialorder %v504_v57, %v1045_v43  ;;  %vm537_vm2 = vcmp.lt.f32.partialorder %v504_v57, %v1045_v43  ;;  %v585_v7 = vsel %vm583_vm12, %v804_v63, 0.0  ;;  %v693_v11 = vsel %vm583_vm12, %v813_v1, 0.0 }
 0x54d   :  { %vm553_vm3 = vmand %vm545_vm1, %vm453_vm10  ;;  %v584_v17 = vsel %vm583_vm12, %v803_v4, 0.0  ;;  %v692_v21 = vsel %vm583_vm12, %v812_v8, 0.0 }
 0x54e   :  { %v514_v59 = vpop.permute.xlu1 %513  ;;  %vm561_vm8 = vmor %vm537_vm2, %vm553_vm3  ;;  %v586_v20 = vadd.f32 %v585_v7, %v584_v17  ;;  %v694_v24 = vadd.f32 %v693_v11, %v692_v21  ;;  %v721_v21 = vrot.slane %v1017_v14, %v642_v46  ;;  %v754_v46 = vand.u32 65535, %v1036_v40 }
 0x54f   :  { %vm547_vm7 = vcmp.eq.f32.partialorder %v514_v59, %v1045_v43  ;;  %vm539_vm2 = vcmp.lt.f32.partialorder %v514_v59, %v1045_v43  ;;  %v805_v5 = vsel %vm561_vm8, 1.0, %v916_v49 }
 0x550   :  { %v618_v62 = vpop.permute.xlu0 %617  ;;  %vm1116_vm13 = vmand %vm547_vm7, %vm1254_vm14  ;;  %vm456_vm7 = vcmp.lt.s32.totalorder %v446_v61, %v1031_v38  ;;  %v587_v18 = vsel %vm583_vm12, %v805_v5, 0.0 }
 0x551   :  { %vm646_vm0 = vcmp.lt.f32.partialorder %v618_v62, %v1055_v48  ;;  %vm654_vm1 = vcmp.eq.f32.partialorder %v618_v62, %v1055_v48  ;;  %vm1148_vm5 = vmor %vm539_vm2, %vm1116_vm13  ;;  %v588_v25 = vadd.f32 %v587_v18, %v586_v20 }
 0x552   :  { %vm662_vm9 = vmand %vm654_vm1, %vm453_vm10  ;;  %v519_v2 = vpop.permute.xlu1 %518  ;;  %v807_v34 = vsel %vm1148_vm5, 1.0, %v916_v49 }
 0x553   :  { %vm670_vm3 = vmor %vm646_vm0, %vm662_vm9  ;;  %vm548_vm14 = vcmp.eq.f32.partialorder %v519_v2, %v1045_v43  ;;  %vm540_vm8 = vcmp.lt.f32.partialorder %v519_v2, %v1045_v43  ;;  %vm457_vm9 = vcmp.lt.s32.totalorder %v447_v16, %v1031_v38  ;;  %v591_v41 = vsel %vm583_vm12, %v807_v34, 0.0 }
 0x554   :  { %vm1140_vm10 = vmor %vm647_vm11, %vm1103_vm6  ;;  %v814_v10 = vsel %vm670_vm3, 1.0, %v916_v49  ;;  %vm1271_vm11 = vcmp.lt.s32.totalorder %v444_v53, %v1031_v38 }
 0x555   :  { %v509_v15 = vpop.permute.xlu0 %508  ;;  %vm1157_vm15 = vmand %vm548_vm14, %vm456_vm7  ;;  %v695_v22 = vsel %vm583_vm12, %v814_v10, 0.0  ;;  %v815_v28 = vsel %vm1140_vm10, 1.0, %v916_v49 }
 0x556   :  { %vm538_vm4 = vcmp.lt.f32.partialorder %v509_v15, %v1045_v43  ;;  %vm546_vm6 = vcmp.eq.f32.partialorder %v509_v15, %v1045_v43  ;;  %v696_v29 = vadd.f32 %v695_v22, %v694_v24  ;;  %vm1179_vm3 = vmor %vm540_vm8, %vm1157_vm15  ;;  %v697_v39 = vsel %vm583_vm12, %v815_v28, 0.0 }
 0x557   :  { %vm554_vm13 = vmand %vm546_vm6, %vm1271_vm11  ;;  %v630_v23 = vpop.permute.xlu1 %629  ;;  %v808_v45 = vsel %vm1179_vm3, 1.0, %v916_v49 }
 0x558   :  { %vm562_vm14 = vmor %vm538_vm4, %vm554_vm13  ;;  %vm649_vm0 = vcmp.lt.f32.partialorder %v630_v23, %v1055_v48  ;;  %vm657_vm1 = vcmp.eq.f32.partialorder %v630_v23, %v1055_v48  ;;  %vm1276_vm4 = vcmp.lt.s32.totalorder %v1084_v56, %v1031_v38  ;;  %v698_v44 = vadd.f32 %v697_v39, %v696_v29 }
 0x559   :  { %v806_v26 = vsel %vm562_vm14, 1.0, %v916_v49  ;;  %vm665_vm2 = vmand %vm657_vm1, %vm456_vm7  ;;  %vm458_vm14 = vcmp.lt.s32.totalorder %v448_v33, %v1031_v38  ;;  %v593_v55 = vsel %vm583_vm12, %v808_v45, 0.0  ;;  %v732_v23 = vrot.slane %v1017_v14, %v731_v19 }
 0x55a   :  { %v589_v31 = vsel %vm583_vm12, %v806_v26, 0.0  ;;  %v626_v32 = vpop.permute.xlu0 %625  ;;  %vm1188_vm7 = vmor %vm649_vm0, %vm665_vm2  ;;  %v722_v26 = vmax.f32 %v1022_v27, %v721_v21  ;;  %v756_v33 = vcvt.s32.f32 %v754_v46 }
 0x55b   :  { %v590_v35 = vadd.f32 %v589_v31, %v588_v25  ;;  %vm648_vm10 = vcmp.lt.f32.partialorder %v626_v32, %v1055_v48  ;;  %vm656_vm15 = vcmp.eq.f32.partialorder %v626_v32, %v1055_v48  ;;  %v634_v37 = vpop.permute.xlu1 %633  ;;  %v817_v52 = vsel %vm1188_vm7, 1.0, %v916_v49 }
 0x55c   :  { %vm664_vm6 = vmand %vm656_vm15, %vm1276_vm4  ;;  %vm658_vm8 = vcmp.eq.f32.partialorder %v634_v37, %v1055_v48  ;;  %vm650_vm5 = vcmp.lt.f32.partialorder %v634_v37, %v1055_v48  ;;  %v701_v56 = vsel %vm583_vm12, %v817_v52, 0.0 }
 0x55d   :  { %vm672_vm11 = vmor %vm648_vm10, %vm664_vm6  ;;  %v592_v47 = vadd.f32 %v591_v41, %v590_v35 }
 0x55e   :  { %v816_v6 = vsel %vm672_vm11, 1.0, %v916_v49  ;;  %vm666_vm13 = vmand %vm658_vm8, %vm457_vm9 }
 0x55f   :  { %v699_v50 = vsel %vm583_vm12, %v816_v6, 0.0  ;;  %v524_v51 = vpop.permute.xlu0 %523  ;;  %vm674_vm0 = vmor %vm650_vm5, %vm666_vm13  ;;  %v594_v58 = vadd.f32 %v593_v55, %v592_v47  ;;  %v742_v6 = vstv %s741_s1  ;;  %v745_v47 = vstv %s821_s28 }
 0x560   :  { %v700_v53 = vadd.f32 %v699_v50, %v698_v44  ;;  %vm541_vm1 = vcmp.lt.f32.partialorder %v524_v51, %v1045_v43  ;;  %vm549_vm2 = vcmp.eq.f32.partialorder %v524_v51, %v1045_v43  ;;  %v529_v54 = vpop.permute.xlu1 %528  ;;  %v818_v59 = vsel %vm674_vm0, 1.0, %v916_v49 }
 0x561   :  { %vm557_vm3 = vmand %vm549_vm2, %vm457_vm9  ;;  %vm542_vm10 = vcmp.lt.f32.partialorder %v529_v54, %v1045_v43  ;;  %vm550_vm15 = vcmp.eq.f32.partialorder %v529_v54, %v1045_v43  ;;  %v703_v1 = vsel %vm583_vm12, %v818_v59, 0.0  ;;  %vm724_vm0 = vcmask 517120  }
 0x562   :  { %vm565_vm4 = vmor %vm541_vm1, %vm557_vm3  ;;  %v702_v60 = vadd.f32 %v701_v56, %v700_v53  ;;  %vm772_vm2 = vcmask 326656  }
 0x563   :  { %v809_v57 = vsel %vm565_vm4, 1.0, %v916_v49  ;;  %vm558_vm7 = vmand %vm550_vm15, %vm458_vm14  ;;  %vm776_vm15 = vcmask 343040   ;;  %vm778_vm4 = vcmask 351232  }
 0x564   :  { %v595_v61 = vsel %vm583_vm12, %v809_v57, 0.0  ;;  %vm566_vm9 = vmor %vm542_vm10, %vm558_vm7  ;;  %v638_v62 = vpop.permute.xlu0 %637  ;;  %v704_v4 = vadd.f32 %v703_v1, %v702_v60  ;;  %vm774_vm10 = vcmask 334848  }
 0x565   :  { %v596_v63 = vadd.f32 %v595_v61, %v594_v58  ;;  %v810_v43 = vsel %vm566_vm9, 1.0, %v916_v49  ;;  %vm651_vm6 = vcmp.lt.f32.partialorder %v638_v62, %v1055_v48  ;;  %vm659_vm8 = vcmp.eq.f32.partialorder %v638_v62, %v1055_v48 }
 0x566   :  { %v597_v0 = vsel %vm583_vm12, %v810_v43, 0.0  ;;  %vm667_vm11 = vmand %vm659_vm8, %vm458_vm14 }
 0x567   :  { %v598_v2 = vadd.f32 %v597_v0, %v596_v63  ;;  %vm675_vm5 = vmor %vm651_vm6, %vm667_vm11 }
 0x568   :  { %v819_v5 = vsel %vm675_vm5, 1.0, %v916_v49 }
 0x569   :  { %v599_v7 = vrot.slane %v598_v2, 4  ;;  %v705_v8 = vsel %vm583_vm12, %v819_v5, 0.0  ;;  %vm716_vm12 = vcmask 1040384  }
 0x56a   :  { %v706_v9 = vadd.f32 %v705_v8, %v704_v4 }
 0x56b   :  { %v600_v10 = vadd.f32 %v599_v7, %v598_v2 }
 0x56c   :  { %v707_v11 = vrot.slane %v706_v9, 4 }
 0x56d   :  { %v601_v13 = vrot.slane %v600_v10, 2 }
 0x56e   :  { %v708_v48 = vadd.f32 %v707_v11, %v706_v9 }
 0x56f   :  { %v602_v15 = vadd.f32 %v601_v13, %v600_v10 }
 0x570   :  { %v709_v16 = vrot.slane %v708_v48, 2 }
 0x571   :  { %v603_v17 = vrot.slane %v602_v15, 1 }
 0x572   :  { %v710_v38 = vadd.f32 %v709_v16, %v708_v48 }
 0x573   :  { %v604_v18 = vadd.f32 %v603_v17, %v602_v15 }
 0x574   :  { %v711_v20 = vrot.slane %v710_v38, 1 }
 0x575   :  { %vm605_vm13 = vcmp.lt.f32.partialorder %v604_v18, 20.0 }
 0x576   :  { %v712_v22 = vadd.f32 %v711_v20, %v710_v38  ;;  %v811_v24 = vsel %vm605_vm13, 1.0, %v916_v49 }
 0x578   :  { %vm713_vm14 = vcmp.lt.f32.partialorder %v712_v22, 20.0 }
 0x579   :  { %v820_v25 = vsel %vm713_vm14, 1.0, %v916_v49 }
 0x57a   :  { %v717_v28 = vsel %vm716_vm12, %v811_v24, %v820_v25 }
 0x57b   :  { %v733_v29 = vmul.f32 %v732_v23, %v717_v28  ;;  %v723_v30 = vmul.f32 %v722_v26, %v717_v28 }
 0x57d   :  { %v734_v31 = vsel %vm724_vm0, %v733_v29, 0.0  ;;  %v725_v12 = vsel %vm724_vm0, %v723_v30, 0.0 }
 0x57e   :  { %735 = vadd.xlane.f32.xlu1 %v734_v31  ;;  %726 = vadd.xlane.f32.xlu0 %v725_v12 }
 0x592   :  { %v759_v32 = vpop.xlane.xlu1 %758 }
 0x593   :  { %vm760_vm1 = vcmp.eq.f32.partialorder %v1039_v42, %v759_v32  ;;  %v765_v44 = vcvt.f32.s32 %v759_v32 }
 0x594   :  { %v761_v14 = vsel %vm760_vm1, %v756_v33, inf }
 0x595   :  { %762 = vmin.xlane.f32.xlu0 %v761_v14  ;;  %v766_v50 = vshll.u32 %v765_v44, 16 }
 0x60b   :  { %v727_v34 = vpop.xlane.xlu0 %726  ;;  %v736_v36 = vpop.xlane.xlu1 %735 }
 0x60c   :  { %v728_v35 = vmul.f32 0.05, %v727_v34  ;;  %v737_v37 = vmul.f32 0.05, %v736_v36 }
 0x60e   :  { %v738_v27 = vadd.f32 1e-10, %v728_v35 }
 0x610   :  { %v739_v39 = vmul.f32 %v738_v27, %v737_v37 }
 0x612   :  { %v740_v41 = vsub.f32 0.0, %v739_v39 }
 0x614   :  { %v743_v45 = vsub.f32 %v740_v41, %v742_v6 }
 0x616   :  { %vm746_vm3 = vcmp.lt.f32.partialorder %v743_v45, %v745_v47  ;;  %v773_v52 = vsel %vm772_vm2, %v1004_v3, %v743_v45 }
 0x617   :  { %v822_v53 = vsel %vm746_vm3, 1.0, %v916_v49 }
 0x618   :  { %v775_v56 = vsel %vm774_vm10, %v773_v52, %v822_v53 }
 0x622   :  { %v763_v40 = vpop.xlane.xlu0 %762 }
 0x623   :  { %v764_v42 = vcvt.f32.s32 %v763_v40 }
 0x625   :  { %v767_v51 = vadd.s32 %v766_v50, %v764_v42 }
 0x627   :  { %v768_v54 = vsel %vm746_vm3, 4294967295, %v767_v51 }
 0x628   :  { %v771_v55 = vcvt.s32.f32 %v768_v54 }
 0x62a   :  { %v777_v57 = vsel %vm776_vm15, %v775_v56, %v771_v55 }
 0x62b   :  { %v779_v58 = vsel %vm778_vm4, %v777_v57, 0.0 }
 0x62c   :  { %780 = vst [vmem:[%s1252_s3] sm:$0x3] %v779_v58 }
 0x62d   :  { %785 = vsyncpa [#allocation3], 1 }

</bundles_post_ra>
